<compile_context>
chip_gen: v5e
topology: v5e:2x2
jax: 0.10.0
libtpu: 0.0.40
codegen_flags: <defaults>
</compile_context>

<pallas_src>
import math
import functools

import jax
import jax.numpy as jnp
from jax.experimental import pallas as pl
from jax.experimental.pallas import tpu as pltpu


_TILE_M = 2048    # row tile for the per-layer table projections (X @ W)
_TILE_N = 4096    # entity tile (lanes) for the DistMult scoring kernel
_TILE_B = 256     # query-batch tile for the DistMult scoring kernel


def _round_up(x, m):
    return (x + m - 1) // m * m


@functools.lru_cache(maxsize=None)
def _vmem_limit_bytes():
    """3/4 of physical VMEM (96 MiB on v5e/v6e, 48 MiB on v7x); safe fallback."""
    try:
        info = pltpu.get_tpu_info()
        cap = getattr(info, "vmem_capacity_bytes", None)
        if cap:
            return int(min(cap - 16 * 1024 * 1024, cap * 3 // 4))
    except Exception:
        pass
    return 48 * 1024 * 1024


# ---------------------------------------------------------------------------
# Pallas kernel 1: table projection  out = x @ w   (bf16 stream, f32 accumulate)
# Used once per conv layer on the full entity table (with [w_in|w_out|w_loop]
# concatenated along Dout) and once on the relation table.
# ---------------------------------------------------------------------------

def _matmul_kernel(x_ref, w_ref, out_ref):
    out_ref[...] = jnp.dot(x_ref[...], w_ref[...],
                           preferred_element_type=jnp.float32)


def dense_project(x, w, *, use_pallas=True, tile_m=_TILE_M):
    """out = x @ w (f32).  x: (M, K) streamed bf16; w: (K, N) resident bf16."""
    M, K = x.shape
    N = w.shape[1]

    xb = x.astype(jnp.bfloat16)
    wb = w.astype(jnp.bfloat16)

    if not use_pallas:
        return jnp.dot(xb, wb, preferred_element_type=jnp.float32)

    k_pad = _round_up(K, 128)
    n_pad = _round_up(N, 128)
    tm = min(tile_m, _round_up(M, 16))          # bf16 packs 16 sublanes/vreg
    m_pad = _round_up(M, tm)

    xb = jnp.pad(xb, ((0, m_pad - M), (0, k_pad - K)))
    wb = jnp.pad(wb, ((0, k_pad - K), (0, n_pad - N)))

    out = pl.pallas_call(
        _matmul_kernel,
        out_shape=jax.ShapeDtypeStruct((m_pad, n_pad), jnp.float32),
        grid=(m_pad // tm,),
        in_specs=[
            pl.BlockSpec((tm, k_pad), lambda i: (i, 0)),      # row tile (streamed)
            pl.BlockSpec((k_pad, n_pad), lambda i: (0, 0)),   # weight (resident)
        ],
        out_specs=pl.BlockSpec((tm, n_pad), lambda i: (i, 0)),
        compiler_params=pltpu.CompilerParams(
            dimension_semantics=("parallel",),
            vmem_limit_bytes=_vmem_limit_bytes()),
    )(xb, wb)
    return out[:M, :N]


# ---------------------------------------------------------------------------
# Pallas kernel 2: DistMult scoring hot path
#   score = sigmoid((sub_emb * rel_emb) @ all_ent.T + bias)
# all_ent streamed as (tn, D) bf16 tiles, contracted in-kernel (NT matmul) --
# no wrapper-side transpose, single HBM pass over the entity table per B block.
# ---------------------------------------------------------------------------

def _distmult_kernel(obj_ref, ent_ref, bias_ref, out_ref):
    # (tb, D) bf16 x (tn, D) bf16, contracting last dims -> f32 logits on MXU
    logits = jax.lax.dot_general(
        obj_ref[...], ent_ref[...],
        dimension_numbers=(((1,), (1,)), ((), ())),
        preferred_element_type=jnp.float32)
    out_ref[...] = jax.nn.sigmoid(logits + bias_ref[...]).astype(out_ref.dtype)


def distmult_score(sub_emb, rel_emb, all_ent, bias, *, use_pallas=True,
                   tile_b=_TILE_B, tile_n=_TILE_N, out_dtype=jnp.float32):
    B, D = sub_emb.shape
    N = all_ent.shape[0]

    # compose obj once, in f32; cast to bf16 only for the MXU LHS
    obj = (sub_emb.astype(jnp.float32)
           * rel_emb.astype(jnp.float32)).astype(jnp.bfloat16)
    entb = all_ent.astype(jnp.bfloat16)
    bias2 = bias.reshape(1, -1).astype(jnp.float32)

    if not use_pallas:
        logits = jax.lax.dot_general(
            obj, entb, dimension_numbers=(((1,), (1,)), ((), ())),
            preferred_element_type=jnp.float32) + bias2
        return jax.nn.sigmoid(logits).astype(out_dtype)

    d_pad = _round_up(D, 128)
    b_pad = _round_up(B, 16)                     # bf16 sublane packing (16 rows)
    tb = min(tile_b, b_pad)
    b_pad = _round_up(b_pad, tb)
    n_pad = _round_up(N, 256)                    # MXU width on v6e/v7x
    tn = min(tile_n, n_pad)
    n_pad = _round_up(n_pad, tn)

    obj = jnp.pad(obj, ((0, b_pad - B), (0, d_pad - D)))
    entb = jnp.pad(entb, ((0, n_pad - N), (0, d_pad - D)))
    bias2 = jnp.pad(bias2, ((0, 0), (0, n_pad - N)))

    out = pl.pallas_call(
        _distmult_kernel,
        out_shape=jax.ShapeDtypeStruct((b_pad, n_pad), out_dtype),
        grid=(b_pad // tb, n_pad // tn),
        in_specs=[
            pl.BlockSpec((tb, d_pad), lambda i, j: (i, 0)),   # obj block (per B tile)
            pl.BlockSpec((tn, d_pad), lambda i, j: (j, 0)),   # entity tile (streamed)
            pl.BlockSpec((1, tn), lambda i, j: (0, j)),       # bias tile
        ],
        out_specs=pl.BlockSpec((tb, tn), lambda i, j: (i, j)),
        compiler_params=pltpu.CompilerParams(
            dimension_semantics=("parallel", "parallel"),
            vmem_limit_bytes=_vmem_limit_bytes()),
    )(obj, entb, bias2)
    # padded rows/columns never reported as scores
    return out[:B, :N]


# ---------------------------------------------------------------------------
# Plain-JAX glue: parameter init + CompGCN conv layer (message passing)
# ---------------------------------------------------------------------------

def get_param(key, shape):
    # torch.nn.init.xavier_normal_ equivalent for 2-D weights
    fan_in, fan_out = shape[1], shape[0]
    std = math.sqrt(2.0 / (fan_in + fan_out))
    return std * jax.random.normal(key, shape, dtype=jnp.float32)


def make_conv_params(key, in_ch, out_ch):
    ks = jax.random.split(key, 5)
    return {
        "w_loop":   get_param(ks[0], (in_ch, out_ch)),
        "w_in":     get_param(ks[1], (in_ch, out_ch)),
        "w_out":    get_param(ks[2], (in_ch, out_ch)),
        "w_rel":    get_param(ks[3], (in_ch, out_ch)),
        "loop_rel": get_param(ks[4], (1, in_ch)),
        "bias":     jnp.zeros((out_ch,), jnp.float32),
        "bn_gamma": jnp.ones((out_ch,), jnp.float32),
        "bn_beta":  jnp.zeros((out_ch,), jnp.float32),
    }


def _compute_norm(edge_index, num_ent):
    row, col = edge_index[0], edge_index[1]
    deg = jnp.zeros((num_ent,), jnp.float32).at[row].add(1.0)
    deg_inv = jnp.where(deg > 0, deg ** -0.5, 0.0)
    return deg_inv[row] * deg_inv[col]


def comp_gcn_conv(params, x, edge_index, edge_type, rel_embed, *, use_pallas=True):
    """Standard CompGCN conv (opn='sub'), eval-mode dropout/BN. Returns (x_out, rel_out).

    Algebraic refactor: (x_j - r) @ W == x_j @ W - r @ W, so the entity and
    relation tables are projected ONCE per layer (fused Pallas matmul with the
    direction weights concatenated along Dout); per-edge work is then only
    gather / subtract (f32) / scale / scatter-add.
    """
    num_ent = x.shape[0]
    out_dim = params["w_in"].shape[1]
    rel_full = jnp.concatenate([rel_embed, params["loop_rel"]], axis=0)
    num_edges = edge_index.shape[1] // 2

    in_index, out_index = edge_index[:, :num_edges], edge_index[:, num_edges:]
    in_type, out_type = edge_type[:num_edges], edge_type[num_edges:]
    in_norm = _compute_norm(in_index, num_ent)
    out_norm = _compute_norm(out_index, num_ent)

    # one fused Pallas matmul over the entity table: X @ [w_in | w_out | w_loop]
    w_ent = jnp.concatenate(
        [params["w_in"], params["w_out"], params["w_loop"]], axis=1)
    xw = dense_project(x, w_ent, use_pallas=use_pallas)
    xw_in, xw_out, xw_loop = jnp.split(xw, 3, axis=1)

    # one fused Pallas matmul over the relation table: R @ [w_in|w_out|w_loop|w_rel]
    w_rel_cat = jnp.concatenate(
        [params["w_in"], params["w_out"], params["w_loop"], params["w_rel"]], axis=1)
    rw = dense_project(rel_full, w_rel_cat, use_pallas=use_pallas)
    rw_in, rw_out, rw_loop, rw_relproj = jnp.split(rw, 4, axis=1)

    def propagate(ei, etype, xw_dir, rw_dir, norm):
        # TODO(synk): gather + scatter-add aggregation has no clean Pallas
        #             equivalent on TPU; kept in plain JAX.
        msg = (xw_dir[ei[1]] - rw_dir[etype]) * norm[:, None]
        return jnp.zeros((num_ent, out_dim), jnp.float32).at[ei[0]].add(msg)

    in_res = propagate(in_index, in_type, xw_in, rw_in, in_norm)
    out_res = propagate(out_index, out_type, xw_out, rw_out, out_norm)
    loop_res = xw_loop - rw_loop[-1:]            # loop relation row, norm = 1

    out = (in_res + out_res + loop_res) * (1.0 / 3.0) + params["bias"]
    # BatchNorm1d in eval mode: running_mean=0, running_var=1, eps=1e-5
    out = (out / jnp.sqrt(1.0 + 1e-5)) * params["bn_gamma"] + params["bn_beta"]
    out = jnp.tanh(out)

    rel_out = rw_relproj[:-1]                    # drop the loop-relation row
    return out, rel_out


# ---------------------------------------------------------------------------
# CompGCN_DistMult forward
# ---------------------------------------------------------------------------

def compgcn_distmult_forward(model, sub, rel, *, use_pallas=True):
    # forward_base ----------------------------------------------------------
    r = model["init_rel"]                                   # score_func != 'transe'
    x, r = comp_gcn_conv(model["conv1"], model["init_embed"],
                         model["edge_index"], model["edge_type"], r,
                         use_pallas=use_pallas)
    # drop1 -> identity (eval)
    x, r = comp_gcn_conv(model["conv2"], x,
                         model["edge_index"], model["edge_type"], r,
                         use_pallas=use_pallas)
    # drop2 -> identity (eval)
    sub_emb = x[sub]
    rel_emb = r[rel]
    # DistMult scoring hot path (Pallas kernel) ------------------------------
    return distmult_score(sub_emb, rel_emb, x, model["ent_bias"],
                          use_pallas=use_pallas)


# ---------------------------------------------------------------------------
# main
# ---------------------------------------------------------------------------

if __name__ == "__main__":
    # config (small, consistent with the module)
    num_ent, num_rel = 256, 4
    init_dim = gcn_dim = embed_dim = 128
    num_edges0 = 64          # original edges; doubled with inverse edges
    batch = 8

    key = jax.random.PRNGKey(0)
    (k_ent, k_rel, k_c1, k_c2, k_src, k_dst, k_et, k_sub, k_qr) = jax.random.split(key, 9)

    # graph
    src = jax.random.randint(k_src, (num_edges0,), 0, num_ent)
    dst = jax.random.randint(k_dst, (num_edges0,), 0, num_ent)
    et = jax.random.randint(k_et, (num_edges0,), 0, num_rel)
    edge_index = jnp.concatenate(
        [jnp.stack([src, dst]), jnp.stack([dst, src])], axis=1).astype(jnp.int32)
    edge_type = jnp.concatenate([et, et + num_rel]).astype(jnp.int32)

    # model parameters (deterministic synthetic init)
    model = {
        "edge_index": edge_index,
        "edge_type": edge_type,
        "init_embed": get_param(k_ent, (num_ent, init_dim)),
        "init_rel":   get_param(k_rel, (num_rel * 2, init_dim)),   # distmult branch
        "conv1": make_conv_params(k_c1, init_dim, gcn_dim),
        "conv2": make_conv_params(k_c2, gcn_dim, embed_dim),
        "ent_bias": jnp.zeros((num_ent,), jnp.float32),            # self.bias
    }

    # query batch
    sub = jax.random.randint(k_sub, (batch,), 0, num_ent).astype(jnp.int32)
    rel = jax.random.randint(k_qr, (batch,), 0, num_rel * 2).astype(jnp.int32)

    fwd_pallas = jax.jit(functools.partial(compgcn_distmult_forward, use_pallas=True))
    fwd_ref = jax.jit(functools.partial(compgcn_distmult_forward, use_pallas=False))

    score = fwd_pallas(model, sub, rel)
    score = jax.block_until_ready(score)
    assert score.shape == (batch, num_ent)

    # sanity check: Pallas kernels vs plain-JAX path with identical bf16/f32 math
    ref = jax.block_until_ready(fwd_ref(model, sub, rel))
    assert jnp.allclose(score, ref, atol=1e-3, rtol=1e-3), "Pallas kernel mismatch"

    print("KERNEL_OK")
</pallas_src>

<mosaic_0001>
module attributes {stable_mosaic.version = 11 : i64} {
  func.func @_matmul_kernel(%arg0: i32, %arg1: memref<16x128xbf16, #tpu.memory_space<vmem>>, %arg2: memref<128x512xbf16, #tpu.memory_space<vmem>>, %arg3: memref<16x512xf32, #tpu.memory_space<vmem>>) attributes {dimension_semantics = [#tpu.dimension_semantics<parallel>], iteration_bounds = array<i64: 1>, scalar_prefetch = 0 : i64, scratch_operands = 0 : i64, tpu.core_type = #tpu.core_type<tc>, window_params = [{transform_indices = @transform_0, window_bounds = array<i64: 16, 128>}, {pipeline_mode = #tpu.pipeline_mode<synchronous>, transform_indices = @transform_1, window_bounds = array<i64: 128, 512>}, {transform_indices = @transform_2, window_bounds = array<i64: 16, 512>}]} {
    %c0 = arith.constant 0 : index
    %c0_0 = arith.constant 0 : index
    %0 = vector.load %arg1[%c0, %c0_0] : memref<16x128xbf16, #tpu.memory_space<vmem>>, vector<16x128xbf16>
    %c0_1 = arith.constant 0 : index
    %c0_2 = arith.constant 0 : index
    %1 = vector.load %arg2[%c0_1, %c0_2] : memref<128x512xbf16, #tpu.memory_space<vmem>>, vector<128x512xbf16>
    %cst = arith.constant dense<0.000000e+00> : vector<16x512xf32>
    %2 = tpu.matmul %0, %1, %cst {dimension_numbers = #tpu.dot_dimension_numbers<[1], [0], [0], [1], [0, 0, 1, 1], [], []>} : vector<16x128xbf16>, vector<128x512xbf16>, vector<16x512xf32> -> vector<16x512xf32>
    %c0_3 = arith.constant 0 : index
    %c0_4 = arith.constant 0 : index
    %3 = vector.load %arg3[%c0_3, %c0_4] : memref<16x512xf32, #tpu.memory_space<vmem>>, vector<16x512xf32>
    tpu.vector_store %arg3[%c0_3, %c0_4], %2 {strides = array<i32>} : memref<16x512xf32, #tpu.memory_space<vmem>>, vector<16x512xf32>,
    return
  }
  func.func @transform_0(%arg0: i32) -> (i32, i32) {
    %c0_i32 = arith.constant 0 : i32
    %c0_i32_0 = arith.constant 0 : i32
    return %arg0, %c0_i32 : i32, i32
  }
  func.func @transform_1(%arg0: i32) -> (i32, i32) {
    %c0_i32 = arith.constant 0 : i32
    %c0_i32_0 = arith.constant 0 : i32
    %c0_i32_1 = arith.constant 0 : i32
    return %c0_i32, %c0_i32_0 : i32, i32
  }
  func.func @transform_2(%arg0: i32) -> (i32, i32) {
    %c0_i32 = arith.constant 0 : i32
    %c0_i32_0 = arith.constant 0 : i32
    return %arg0, %c0_i32 : i32, i32
  }
}

module attributes {stable_mosaic.version = 11 : i64} {
  func.func @_matmul_kernel(%arg0: i32, %arg1: memref<256x128xbf16, #tpu.memory_space<vmem>>, %arg2: memref<128x384xbf16, #tpu.memory_space<vmem>>, %arg3: memref<256x384xf32, #tpu.memory_space<vmem>>) attributes {dimension_semantics = [#tpu.dimension_semantics<parallel>], iteration_bounds = array<i64: 1>, scalar_prefetch = 0 : i64, scratch_operands = 0 : i64, tpu.core_type = #tpu.core_type<tc>, window_params = [{transform_indices = @transform_0, window_bounds = array<i64: 256, 128>}, {pipeline_mode = #tpu.pipeline_mode<synchronous>, transform_indices = @transform_1, window_bounds = array<i64: 128, 384>}, {transform_indices = @transform_2, window_bounds = array<i64: 256, 384>}]} {
    %c0 = arith.constant 0 : index
    %c0_0 = arith.constant 0 : index
    %0 = vector.load %arg1[%c0, %c0_0] : memref<256x128xbf16, #tpu.memory_space<vmem>>, vector<256x128xbf16>
    %c0_1 = arith.constant 0 : index
    %c0_2 = arith.constant 0 : index
    %1 = vector.load %arg2[%c0_1, %c0_2] : memref<128x384xbf16, #tpu.memory_space<vmem>>, vector<128x384xbf16>
    %cst = arith.constant dense<0.000000e+00> : vector<256x384xf32>
    %2 = tpu.matmul %0, %1, %cst {dimension_numbers = #tpu.dot_dimension_numbers<[1], [0], [0], [1], [0, 0, 1, 1], [], []>} : vector<256x128xbf16>, vector<128x384xbf16>, vector<256x384xf32> -> vector<256x384xf32>
    %c0_3 = arith.constant 0 : index
    %c0_4 = arith.constant 0 : index
    %3 = vector.load %arg3[%c0_3, %c0_4] : memref<256x384xf32, #tpu.memory_space<vmem>>, vector<256x384xf32>
    tpu.vector_store %arg3[%c0_3, %c0_4], %2 {strides = array<i32>} : memref<256x384xf32, #tpu.memory_space<vmem>>, vector<256x384xf32>,
    return
  }
  func.func @transform_0(%arg0: i32) -> (i32, i32) {
    %c0_i32 = arith.constant 0 : i32
    %c0_i32_0 = arith.constant 0 : i32
    return %arg0, %c0_i32 : i32, i32
  }
  func.func @transform_1(%arg0: i32) -> (i32, i32) {
    %c0_i32 = arith.constant 0 : i32
    %c0_i32_0 = arith.constant 0 : i32
    %c0_i32_1 = arith.constant 0 : i32
    return %c0_i32, %c0_i32_0 : i32, i32
  }
  func.func @transform_2(%arg0: i32) -> (i32, i32) {
    %c0_i32 = arith.constant 0 : i32
    %c0_i32_0 = arith.constant 0 : i32
    return %arg0, %c0_i32 : i32, i32
  }
}

module attributes {stable_mosaic.version = 11 : i64} {
  func.func @_distmult_kernel(%arg0: i32, %arg1: i32, %arg2: memref<16x128xbf16, #tpu.memory_space<vmem>>, %arg3: memref<256x128xbf16, #tpu.memory_space<vmem>>, %arg4: memref<1x256xf32, #tpu.memory_space<vmem>>, %arg5: memref<16x256xf32, #tpu.memory_space<vmem>>) attributes {dimension_semantics = [#tpu.dimension_semantics<parallel>, #tpu.dimension_semantics<parallel>], iteration_bounds = array<i64: 1, 1>, scalar_prefetch = 0 : i64, scratch_operands = 0 : i64, tpu.core_type = #tpu.core_type<tc>, window_params = [{transform_indices = @transform_0, window_bounds = array<i64: 16, 128>}, {transform_indices = @transform_1, window_bounds = array<i64: 256, 128>}, {transform_indices = @transform_2, window_bounds = array<i64: 1, 256>}, {transform_indices = @transform_3, window_bounds = array<i64: 16, 256>}]} {
    %c0 = arith.constant 0 : index
    %c0_0 = arith.constant 0 : index
    %0 = vector.load %arg2[%c0, %c0_0] : memref<16x128xbf16, #tpu.memory_space<vmem>>, vector<16x128xbf16>
    %c0_1 = arith.constant 0 : index
    %c0_2 = arith.constant 0 : index
    %1 = vector.load %arg3[%c0_1, %c0_2] : memref<256x128xbf16, #tpu.memory_space<vmem>>, vector<256x128xbf16>
    %cst = arith.constant dense<0.000000e+00> : vector<16x256xf32>
    %2 = tpu.matmul %0, %1, %cst {dimension_numbers = #tpu.dot_dimension_numbers<[1], [1], [0], [0], [0, 0, 1, 0], [], []>} : vector<16x128xbf16>, vector<256x128xbf16>, vector<16x256xf32> -> vector<16x256xf32>
    %c0_3 = arith.constant 0 : index
    %c0_4 = arith.constant 0 : index
    %3 = vector.load %arg4[%c0_3, %c0_4] : memref<1x256xf32, #tpu.memory_space<vmem>>, vector<1x256xf32>
    %4 = vector.broadcast %3 : vector<1x256xf32> to vector<16x256xf32>
    %5 = arith.addf %2, %4 : vector<16x256xf32>
    %6 = arith.negf %5 : vector<16x256xf32>
    %7 = math.exp %6 : vector<16x256xf32>
    %cst_5 = arith.constant 1.000000e+00 : f32
    %8 = vector.broadcast %cst_5 : f32 to vector<16x256xf32>
    %9 = arith.addf %8, %7 : vector<16x256xf32>
    %10 = arith.divf %8, %9 : vector<16x256xf32>
    %c0_6 = arith.constant 0 : index
    %c0_7 = arith.constant 0 : index
    %11 = vector.load %arg5[%c0_6, %c0_7] : memref<16x256xf32, #tpu.memory_space<vmem>>, vector<16x256xf32>
    tpu.vector_store %arg5[%c0_6, %c0_7], %10 {strides = array<i32>} : memref<16x256xf32, #tpu.memory_space<vmem>>, vector<16x256xf32>,
    return
  }
  func.func @transform_0(%arg0: i32, %arg1: i32) -> (i32, i32) {
    %c0_i32 = arith.constant 0 : i32
    %c0_i32_0 = arith.constant 0 : i32
    return %arg0, %c0_i32 : i32, i32
  }
  func.func @transform_1(%arg0: i32, %arg1: i32) -> (i32, i32) {
    %c0_i32 = arith.constant 0 : i32
    %c0_i32_0 = arith.constant 0 : i32
    return %arg1, %c0_i32 : i32, i32
  }
  func.func @transform_2(%arg0: i32, %arg1: i32) -> (i32, i32) {
    %c0_i32 = arith.constant 0 : i32
    %c0_i32_0 = arith.constant 0 : i32
    return %c0_i32, %arg1 : i32, i32
  }
  func.func @transform_3(%arg0: i32, %arg1: i32) -> (i32, i32) {
    %c0_i32 = arith.constant 0 : i32
    return %arg0, %arg1 : i32, i32
  }
}

</mosaic_0001>

<bundles_post_ra>
// kernel: mul.2
= control target key start
LH: loop header
LB: loop body
LE: loop exit
PB: predicated region body
PF: predicated region fallthrough
CT: control target
= control target key end

     0   :  { %s34_s0 = inlined_call_operand.vmem [shape: f32[64], index: 0, kind: input, shape index: {}]   ;;  %s35_s1 = inlined_call_operand.vmem [shape: f32[64], index: 1, kind: input, shape index: {}]   ;;  %s36_s2 = inlined_call_operand.vmem [shape: f32[64], index: 2, kind: output, shape index: {}]  }
   0x1   :  { %v3_v0 = vld [vmem:[%s34_s0] sm:$0x1] }
   0x2   :  { %v4_v1 = vld [vmem:[%s35_s1] sm:$0x1] }
   0x3   :  { %v7_v2 = vmul.f32 %v4_v1, %v3_v0 }
   0x5   :  { %9 = vst [vmem:[%s36_s2] sm:$0x1] %v7_v2 }

// kernel: compgcn_distmult_forward.6
= control target key start
LH: loop header
LB: loop body
LE: loop exit
PB: predicated region body
PF: predicated region fallthrough
CT: control target
= control target key end

     0   :  { %s678_s1 = inlined_call_operand.vmem [shape: bf16[128,512], index: 1, kind: input, shape index: {}]   ;;  %s679_s0 = inlined_call_operand.vmem [shape: bf16[16,128], index: 0, kind: input, shape index: {}]   ;;  %s680_s2 = inlined_call_operand.vmem [shape: f32[16,512], index: 2, kind: output, shape index: {}]  }
   0x1   :  { %v397_v0 = vld [vmem:[%s678_s1 + $0xe0] sm:$0xf]  ;;  %v442_v1 = vld [vmem:[%s678_s1 + $0xec] sm:$0xf0]  ;;  %v440_v2 = vld [vmem:[%s678_s1 + $0xe4] sm:$0xf] }
   0x2   :  { %v398_v3 = vor.u32 %v442_v1, %v397_v0  ;;  %v399_v4 = vld [vmem:[%s678_s1 + $0xf0] sm:$0xf0]  ;;  %v405_v5 = vld [vmem:[%s678_s1 + $0xe8] sm:$0xf]  ;;  %v443_v6 = vld [vmem:[%s678_s1 + $0xf4] sm:$0xf0] }
   0x3   :  { %v402_v7 = vor.u32 %v440_v2, %v399_v4  ;;  %v406_v8 = vor.u32 %v443_v6, %v405_v5  ;;  %v441_v9 = vld [vmem:[%s678_s1 + $0xec] sm:$0xf]  ;;  %v407_v10 = vld [vmem:[%s678_s1 + $0xf8] sm:$0xf0]  ;;  %v381_v11 = vld [vmem:[%s678_s1 + $0xc0] sm:$0xf] }
   0x4   :  { %211 = vmatpush.bf16.msra.mxu0 %v398_v3  ;;  %v410_v12 = vor.u32 %v441_v9, %v407_v10  ;;  %v438_v13 = vld [vmem:[%s678_s1 + $0xcc] sm:$0xf0]  ;;  %v436_v14 = vld [vmem:[%s678_s1 + $0xc4] sm:$0xf]  ;;  %v383_v15 = vld [vmem:[%s678_s1 + $0xd0] sm:$0xf0] }
   0x5   :  { %225 = vmatpush.bf16.msra.mxu1 %v402_v7  ;;  %239 = vmatpush.bf16.msra.mxu2 %v406_v8  ;;  %v382_v16 = vor.u32 %v438_v13, %v381_v11  ;;  %v386_v17 = vor.u32 %v436_v14, %v383_v15  ;;  %v389_v18 = vld [vmem:[%s678_s1 + $0xc8] sm:$0xf]  ;;  %v439_v19 = vld [vmem:[%s678_s1 + $0xd4] sm:$0xf0]  ;;  %v437_v20 = vld [vmem:[%s678_s1 + $0xcc] sm:$0xf] }
   0x6   :  { %253 = vmatpush.bf16.msra.mxu3 %v410_v12  ;;  %v390_v21 = vor.u32 %v439_v19, %v389_v18  ;;  %v391_v22 = vld [vmem:[%s678_s1 + $0xd8] sm:$0xf0]  ;;  %v365_v23 = vld [vmem:[%s678_s1 + $0xa0] sm:$0xf]  ;;  %v434_v24 = vld [vmem:[%s678_s1 + $0xac] sm:$0xf0] }
   0x7   :  { %v394_v25 = vor.u32 %v437_v20, %v391_v22  ;;  %v432_v26 = vld [vmem:[%s678_s1 + $0xa4] sm:$0xf]  ;;  %v367_v27 = vld [vmem:[%s678_s1 + $0xb0] sm:$0xf0]  ;;  %v373_v28 = vld [vmem:[%s678_s1 + $0xa8] sm:$0xf]  ;;  %v366_v29 = vor.u32 %v434_v24, %v365_v23 }
   0x8   :  { %212 = vmatpush.bf16.msra.mxu0 %v382_v16  ;;  %v435_v30 = vld [vmem:[%s678_s1 + $0xb4] sm:$0xf0]  ;;  %v433_v31 = vld [vmem:[%s678_s1 + $0xac] sm:$0xf]  ;;  %v375_v32 = vld [vmem:[%s678_s1 + $0xb8] sm:$0xf0]  ;;  %v370_v33 = vor.u32 %v432_v26, %v367_v27 }
   0x9   :  { %226 = vmatpush.bf16.msra.mxu1 %v386_v17  ;;  %240 = vmatpush.bf16.msra.mxu2 %v390_v21  ;;  %v374_v34 = vor.u32 %v435_v30, %v373_v28  ;;  %v349_v35 = vld [vmem:[%s678_s1 + $0x80] sm:$0xf]  ;;  %v430_v36 = vld [vmem:[%s678_s1 + $0x8c] sm:$0xf0]  ;;  %v428_v37 = vld [vmem:[%s678_s1 + $0x84] sm:$0xf]  ;;  %v378_v38 = vor.u32 %v433_v31, %v375_v32 }
   0xa   :  { %254 = vmatpush.bf16.msra.mxu3 %v394_v25  ;;  %v351_v39 = vld [vmem:[%s678_s1 + $0x90] sm:$0xf0]  ;;  %v357_v40 = vld [vmem:[%s678_s1 + $0x88] sm:$0xf]  ;;  %v431_v41 = vld [vmem:[%s678_s1 + $0x94] sm:$0xf0]  ;;  %v350_v44 = vor.u32 %v430_v36, %v349_v35 }
   0xb   :  { %v429_v42 = vld [vmem:[%s678_s1 + $0x8c] sm:$0xf]  ;;  %v359_v43 = vld [vmem:[%s678_s1 + $0x98] sm:$0xf0]  ;;  %v354_v45 = vor.u32 %v428_v37, %v351_v39  ;;  %v358_v46 = vor.u32 %v431_v41, %v357_v40  ;;  %v333_v47 = vld [vmem:[%s678_s1 + $0x60] sm:$0xf] }
   0xc   :  { %213 = vmatpush.bf16.msra.mxu0 %v366_v29  ;;  %v426_v48 = vld [vmem:[%s678_s1 + $0x6c] sm:$0xf0]  ;;  %v424_v49 = vld [vmem:[%s678_s1 + $0x64] sm:$0xf]  ;;  %v362_v50 = vor.u32 %v429_v42, %v359_v43  ;;  %v335_v51 = vld [vmem:[%s678_s1 + $0x70] sm:$0xf0] }
   0xd   :  { %227 = vmatpush.bf16.msra.mxu1 %v370_v33  ;;  %241 = vmatpush.bf16.msra.mxu2 %v374_v34  ;;  %v341_v52 = vld [vmem:[%s678_s1 + $0x68] sm:$0xf]  ;;  %v427_v53 = vld [vmem:[%s678_s1 + $0x74] sm:$0xf0]  ;;  %v425_v54 = vld [vmem:[%s678_s1 + $0x6c] sm:$0xf]  ;;  %v334_v56 = vor.u32 %v426_v48, %v333_v47  ;;  %v338_v57 = vor.u32 %v424_v49, %v335_v51 }
   0xe   :  { %255 = vmatpush.bf16.msra.mxu3 %v378_v38  ;;  %v343_v55 = vld [vmem:[%s678_s1 + $0x78] sm:$0xf0]  ;;  %v342_v58 = vor.u32 %v427_v53, %v341_v52  ;;  %v317_v59 = vld [vmem:[%s678_s1 + $0x40] sm:$0xf]  ;;  %v422_v60 = vld [vmem:[%s678_s1 + $0x4c] sm:$0xf0] }
   0xf   :  { %v420_v61 = vld [vmem:[%s678_s1 + $0x44] sm:$0xf]  ;;  %v346_v62 = vor.u32 %v425_v54, %v343_v55  ;;  %v319_v63 = vld [vmem:[%s678_s1 + $0x50] sm:$0xf0]  ;;  %v325_v0 = vld [vmem:[%s678_s1 + $0x48] sm:$0xf]  ;;  %v318_v4 = vor.u32 %v422_v60, %v317_v59 }
  0x10   :  { %214 = vmatpush.bf16.msra.mxu0 %v350_v44  ;;  %v423_v1 = vld [vmem:[%s678_s1 + $0x54] sm:$0xf0]  ;;  %v421_v2 = vld [vmem:[%s678_s1 + $0x4c] sm:$0xf]  ;;  %v327_v3 = vld [vmem:[%s678_s1 + $0x58] sm:$0xf0]  ;;  %v322_v5 = vor.u32 %v420_v61, %v319_v63 }
  0x11   :  { %228 = vmatpush.bf16.msra.mxu1 %v354_v45  ;;  %242 = vmatpush.bf16.msra.mxu2 %v358_v46  ;;  %v326_v6 = vor.u32 %v423_v1, %v325_v0  ;;  %v301_v7 = vld [vmem:[%s678_s1 + $0x20] sm:$0xf]  ;;  %v418_v8 = vld [vmem:[%s678_s1 + $0x2c] sm:$0xf0]  ;;  %v416_v9 = vld [vmem:[%s678_s1 + $0x24] sm:$0xf]  ;;  %v330_v10 = vor.u32 %v421_v2, %v327_v3 }
  0x12   :  { %256 = vmatpush.bf16.msra.mxu3 %v362_v50  ;;  %v303_v11 = vld [vmem:[%s678_s1 + $0x30] sm:$0xf0]  ;;  %v309_v12 = vld [vmem:[%s678_s1 + $0x28] sm:$0xf]  ;;  %v419_v13 = vld [vmem:[%s678_s1 + $0x34] sm:$0xf0]  ;;  %v302_v16 = vor.u32 %v418_v8, %v301_v7 }
  0x13   :  { %v417_v14 = vld [vmem:[%s678_s1 + $0x2c] sm:$0xf]  ;;  %v311_v15 = vld [vmem:[%s678_s1 + $0x38] sm:$0xf0]  ;;  %v306_v17 = vor.u32 %v416_v9, %v303_v11  ;;  %v310_v18 = vor.u32 %v419_v13, %v309_v12  ;;  %v285_v19 = vld [vmem:[%s678_s1] sm:$0xf] }
  0x14   :  { %215 = vmatpush.bf16.msra.mxu0 %v334_v56  ;;  %v414_v20 = vld [vmem:[%s678_s1 + $0xc] sm:$0xf0]  ;;  %v412_v21 = vld [vmem:[%s678_s1 + $0x4] sm:$0xf]  ;;  %v314_v22 = vor.u32 %v417_v14, %v311_v15  ;;  %v287_v23 = vld [vmem:[%s678_s1 + $0x10] sm:$0xf0] }
  0x15   :  { %229 = vmatpush.bf16.msra.mxu1 %v338_v57  ;;  %243 = vmatpush.bf16.msra.mxu2 %v342_v58  ;;  %v293_v24 = vld [vmem:[%s678_s1 + $0x8] sm:$0xf]  ;;  %v415_v25 = vld [vmem:[%s678_s1 + $0x14] sm:$0xf0]  ;;  %v413_v26 = vld [vmem:[%s678_s1 + $0xc] sm:$0xf]  ;;  %v286_v28 = vor.u32 %v414_v20, %v285_v19  ;;  %v290_v29 = vor.u32 %v412_v21, %v287_v23 }
  0x16   :  { %257 = vmatpush.bf16.msra.mxu3 %v346_v62  ;;  %v295_v27 = vld [vmem:[%s678_s1 + $0x18] sm:$0xf0]  ;;  %v294_v30 = vor.u32 %v415_v25, %v293_v24  ;;  %v411_v32 = vld [vmem:[%s679_s0] sm:$0xff] }
  0x17   :  { %v298_v31 = vor.u32 %v413_v26, %v295_v27 }
  0x18   :  { %216 = vmatpush.bf16.msra.mxu0 %v318_v4 }
  0x19   :  { %230 = vmatpush.bf16.msra.mxu1 %v322_v5  ;;  %244 = vmatpush.bf16.msra.mxu2 %v326_v6 }
  0x1a   :  { %258 = vmatpush.bf16.msra.mxu3 %v330_v10 }
  0x1c   :  { %217 = vmatpush.bf16.msra.mxu0 %v302_v16 }
  0x1d   :  { %231 = vmatpush.bf16.msra.mxu1 %v306_v17  ;;  %245 = vmatpush.bf16.msra.mxu2 %v310_v18 }
  0x1e   :  { %259 = vmatpush.bf16.msra.mxu3 %v314_v22 }
  0x20   :  { %218 = vmatpush.bf16.msra.mxu0 %v286_v28 }
  0x21   :  { %232 = vmatpush.bf16.msra.mxu1 %v290_v29  ;;  %246 = vmatpush.bf16.msra.mxu2 %v294_v30 }
  0x22   :  { %260 = vmatpush.bf16.msra.mxu3 %v298_v31 }
  0x23   :  { %219 = vmatmul.bf16.vlgmr.msra.gmra.mxu0 %v411_v32 }
  0x24   :  { %233 = vmatmul.bf16.vlgmr.msra.gmra.mxu1 %v411_v32  ;;  %247 = vmatmul.bf16.vlgmr.msra.gmra.mxu2 %v411_v32 }
  0x25   :  { %261 = vmatmul.bf16.vlgmr.msra.gmra.mxu3 %v411_v32 }
  0xa0   :  { %v220_v33 = vpop.f32.mrf.mxu0 }
  0xa1   :  { %267 = vst [vmem:[%s680_s2] sm:$0xff] %v220_v33  ;;  %v234_v34 = vpop.f32.mrf.mxu1 }
  0xa2   :  { %268 = vst [vmem:[%s680_s2 + $0x8] sm:$0xff] %v234_v34 }
  0xa7   :  { %v248_v35 = vpop.f32.mrf.mxu2 }
  0xa8   :  { %269 = vst [vmem:[%s680_s2 + $0x10] sm:$0xff] %v248_v35  ;;  %v262_v36 = vpop.f32.mrf.mxu3  ;;  %v222_v37 = vpop.f32.mrf.mxu0 }
  0xa9   :  { %270 = vst [vmem:[%s680_s2 + $0x18] sm:$0xff] %v262_v36  ;;  %v236_v38 = vpop.f32.mrf.mxu1 }
  0xaa   :  { %271 = vst [vmem:[%s680_s2 + $0x20] sm:$0xff] %v222_v37 }
  0xab   :  { %272 = vst [vmem:[%s680_s2 + $0x28] sm:$0xff] %v236_v38 }
  0xaf   :  { %v250_v39 = vpop.f32.mrf.mxu2 }
  0xb0   :  { %273 = vst [vmem:[%s680_s2 + $0x30] sm:$0xff] %v250_v39  ;;  %v264_v40 = vpop.f32.mrf.mxu3 }
  0xb1   :  { %274 = vst [vmem:[%s680_s2 + $0x38] sm:$0xff] %v264_v40 }

// kernel: compgcn_distmult_forward.5
= control target key start
LH: loop header
LB: loop body
LE: loop exit
PB: predicated region body
PF: predicated region fallthrough
CT: control target
= control target key end

     0   :  { %s1445_s1 = inlined_call_operand.vmem [shape: bf16[128,384], index: 1, kind: input, shape index: {}]   ;;  %s1446_s0 = inlined_call_operand.vmem [shape: bf16[256,128], index: 0, kind: input, shape index: {}]   ;;  %s1447_s2 = inlined_call_operand.vmem [shape: f32[256,384], index: 2, kind: output, shape index: {}]  }
   0x1   :  { %v816_v0 = vld [vmem:[%s1445_s1 + $0xa8] sm:$0xf]  ;;  %v864_v1 = vld [vmem:[%s1445_s1 + $0xb0] sm:$0xf0]  ;;  %v863_v2 = vld [vmem:[%s1445_s1 + $0xac] sm:$0xf] }
   0x2   :  { %v817_v3 = vor.u32 %v864_v1, %v816_v0  ;;  %v818_v4 = vld [vmem:[%s1445_s1 + $0xb4] sm:$0xf0]  ;;  %v824_v5 = vld [vmem:[%s1445_s1 + $0xb0] sm:$0xf]  ;;  %v865_v6 = vld [vmem:[%s1445_s1 + $0xb8] sm:$0xf0] }
   0x3   :  { %v923_v7 = vor.u32 %v863_v2, %v818_v4  ;;  %v925_v8 = vor.u32 %v865_v6, %v824_v5  ;;  %v804_v9 = vld [vmem:[%s1445_s1 + $0x90] sm:$0xf]  ;;  %v861_v10 = vld [vmem:[%s1445_s1 + $0x98] sm:$0xf0]  ;;  %v860_v11 = vld [vmem:[%s1445_s1 + $0x94] sm:$0xf] }
   0x4   :  { %299 = vmatpush.bf16.msra.mxu0 %v817_v3  ;;  %866 = vmatpush.bf16.msra.mxu3 %v817_v3  ;;  %v805_v12 = vor.u32 %v861_v10, %v804_v9  ;;  %v806_v13 = vld [vmem:[%s1445_s1 + $0x9c] sm:$0xf0]  ;;  %v812_v14 = vld [vmem:[%s1445_s1 + $0x98] sm:$0xf]  ;;  %v862_v15 = vld [vmem:[%s1445_s1 + $0xa0] sm:$0xf0] }
   0x5   :  { %388 = vmatpush.bf16.msra.mxu1 %v923_v7  ;;  %477 = vmatpush.bf16.msra.mxu2 %v925_v8  ;;  %v947_v16 = vor.u32 %v860_v11, %v806_v13  ;;  %v949_v17 = vor.u32 %v862_v15, %v812_v14  ;;  %v792_v18 = vld [vmem:[%s1445_s1 + $0x78] sm:$0xf]  ;;  %v858_v19 = vld [vmem:[%s1445_s1 + $0x80] sm:$0xf0]  ;;  %v857_v20 = vld [vmem:[%s1445_s1 + $0x7c] sm:$0xf] }
   0x6   :  { %v794_v21 = vld [vmem:[%s1445_s1 + $0x84] sm:$0xf0]  ;;  %v800_v22 = vld [vmem:[%s1445_s1 + $0x80] sm:$0xf]  ;;  %v859_v23 = vld [vmem:[%s1445_s1 + $0x88] sm:$0xf0]  ;;  %v793_v24 = vor.u32 %v858_v19, %v792_v18 }
   0x7   :  { %v971_v25 = vor.u32 %v857_v20, %v794_v21  ;;  %v973_v26 = vor.u32 %v859_v23, %v800_v22  ;;  %v780_v27 = vld [vmem:[%s1445_s1 + $0x60] sm:$0xf]  ;;  %v855_v28 = vld [vmem:[%s1445_s1 + $0x68] sm:$0xf0]  ;;  %v854_v29 = vld [vmem:[%s1445_s1 + $0x64] sm:$0xf] }
   0x8   :  { %300 = vmatpush.bf16.msra.mxu0 %v805_v12  ;;  %867 = vmatpush.bf16.msra.mxu3 %v805_v12  ;;  %v782_v30 = vld [vmem:[%s1445_s1 + $0x6c] sm:$0xf0]  ;;  %v788_v31 = vld [vmem:[%s1445_s1 + $0x68] sm:$0xf]  ;;  %v856_v32 = vld [vmem:[%s1445_s1 + $0x70] sm:$0xf0]  ;;  %v781_v33 = vor.u32 %v855_v28, %v780_v27 }
   0x9   :  { %389 = vmatpush.bf16.msra.mxu1 %v947_v16  ;;  %478 = vmatpush.bf16.msra.mxu2 %v949_v17  ;;  %v995_v34 = vor.u32 %v854_v29, %v782_v30  ;;  %v997_v35 = vor.u32 %v856_v32, %v788_v31  ;;  %v768_v36 = vld [vmem:[%s1445_s1 + $0x48] sm:$0xf]  ;;  %v852_v37 = vld [vmem:[%s1445_s1 + $0x50] sm:$0xf0]  ;;  %v851_v38 = vld [vmem:[%s1445_s1 + $0x4c] sm:$0xf] }
   0xa   :  { %v770_v39 = vld [vmem:[%s1445_s1 + $0x54] sm:$0xf0]  ;;  %v776_v40 = vld [vmem:[%s1445_s1 + $0x50] sm:$0xf]  ;;  %v853_v41 = vld [vmem:[%s1445_s1 + $0x58] sm:$0xf0]  ;;  %v769_v42 = vor.u32 %v852_v37, %v768_v36 }
   0xb   :  { %v773_v43 = vor.u32 %v851_v38, %v770_v39  ;;  %v1019_v44 = vor.u32 %v853_v41, %v776_v40  ;;  %v756_v45 = vld [vmem:[%s1445_s1 + $0x30] sm:$0xf]  ;;  %v849_v46 = vld [vmem:[%s1445_s1 + $0x38] sm:$0xf0]  ;;  %v848_v47 = vld [vmem:[%s1445_s1 + $0x34] sm:$0xf] }
   0xc   :  { %301 = vmatpush.bf16.msra.mxu0 %v793_v24  ;;  %868 = vmatpush.bf16.msra.mxu3 %v793_v24  ;;  %v758_v48 = vld [vmem:[%s1445_s1 + $0x3c] sm:$0xf0]  ;;  %v764_v49 = vld [vmem:[%s1445_s1 + $0x38] sm:$0xf]  ;;  %v850_v50 = vld [vmem:[%s1445_s1 + $0x40] sm:$0xf0]  ;;  %v757_v51 = vor.u32 %v849_v46, %v756_v45 }
   0xd   :  { %390 = vmatpush.bf16.msra.mxu1 %v971_v25  ;;  %479 = vmatpush.bf16.msra.mxu2 %v973_v26  ;;  %v761_v52 = vor.u32 %v848_v47, %v758_v48  ;;  %v1040_v53 = vor.u32 %v850_v50, %v764_v49  ;;  %v744_v54 = vld [vmem:[%s1445_s1 + $0x18] sm:$0xf]  ;;  %v846_v55 = vld [vmem:[%s1445_s1 + $0x20] sm:$0xf0]  ;;  %v845_v56 = vld [vmem:[%s1445_s1 + $0x1c] sm:$0xf] }
   0xe   :  { %v746_v57 = vld [vmem:[%s1445_s1 + $0x24] sm:$0xf0]  ;;  %v752_v58 = vld [vmem:[%s1445_s1 + $0x20] sm:$0xf]  ;;  %v847_v59 = vld [vmem:[%s1445_s1 + $0x28] sm:$0xf0]  ;;  %v745_v60 = vor.u32 %v846_v55, %v744_v54 }
   0xf   :  { %v749_v61 = vor.u32 %v845_v56, %v746_v57  ;;  %v753_v62 = vor.u32 %v847_v59, %v752_v58  ;;  %v732_v63 = vld [vmem:[%s1445_s1] sm:$0xf]  ;;  %v843_v0 = vld [vmem:[%s1445_s1 + $0x8] sm:$0xf0]  ;;  %v842_v1 = vld [vmem:[%s1445_s1 + $0x4] sm:$0xf] }
  0x10   :  { %302 = vmatpush.bf16.msra.mxu0 %v781_v33  ;;  %869 = vmatpush.bf16.msra.mxu3 %v781_v33  ;;  %v734_v2 = vld [vmem:[%s1445_s1 + $0xc] sm:$0xf0]  ;;  %v740_v3 = vld [vmem:[%s1445_s1 + $0x8] sm:$0xf]  ;;  %v844_v4 = vld [vmem:[%s1445_s1 + $0x10] sm:$0xf0]  ;;  %v733_v5 = vor.u32 %v843_v0, %v732_v63 }
  0x11   :  { %391 = vmatpush.bf16.msra.mxu1 %v995_v34  ;;  %480 = vmatpush.bf16.msra.mxu2 %v997_v35  ;;  %v737_v6 = vor.u32 %v842_v1, %v734_v2  ;;  %v741_v9 = vor.u32 %v844_v4, %v740_v3  ;;  %v826_v10 = vld [vmem:[%s1446_s0] sm:$0xff]  ;;  %v827_v12 = vld [vmem:[%s1446_s0 + $0x8] sm:$0xff]  ;;  %v1107_v14 = vld [vmem:[%s1446_s0 + $0x70] sm:$0xff] }
  0x12   :  { %v1085_v11 = vld [vmem:[%s1446_s0 + $0x60] sm:$0xff]  ;;  %v1098_v13 = vld [vmem:[%s1446_s0 + $0x68] sm:$0xff]  ;;  %v829_v15 = vld [vmem:[%s1446_s0 + $0x18] sm:$0xff] }
  0x13   :  { %v832_v18 = vld [vmem:[%s1446_s0 + $0x30] sm:$0xff]  ;;  %v833_v19 = vld [vmem:[%s1446_s0 + $0x38] sm:$0xff]  ;;  %v834_v20 = vld [vmem:[%s1446_s0 + $0x40] sm:$0xff] }
  0x14   :  { %303 = vmatpush.bf16.msra.mxu0 %v769_v42  ;;  %870 = vmatpush.bf16.msra.mxu3 %v769_v42  ;;  %v835_v29 = vld [vmem:[%s1446_s0 + $0x48] sm:$0xff]  ;;  %v836_v38 = vld [vmem:[%s1446_s0 + $0x50] sm:$0xff]  ;;  %v837_v47 = vld [vmem:[%s1446_s0 + $0x58] sm:$0xff] }
  0x15   :  { %392 = vmatpush.bf16.msra.mxu1 %v773_v43  ;;  %481 = vmatpush.bf16.msra.mxu2 %v1019_v44 }
  0x18   :  { %304 = vmatpush.bf16.msra.mxu0 %v757_v51  ;;  %871 = vmatpush.bf16.msra.mxu3 %v757_v51 }
  0x19   :  { %393 = vmatpush.bf16.msra.mxu1 %v761_v52  ;;  %482 = vmatpush.bf16.msra.mxu2 %v1040_v53 }
  0x1c   :  { %305 = vmatpush.bf16.msra.mxu0 %v745_v60  ;;  %872 = vmatpush.bf16.msra.mxu3 %v745_v60 }
  0x1d   :  { %394 = vmatpush.bf16.msra.mxu1 %v749_v61  ;;  %483 = vmatpush.bf16.msra.mxu2 %v753_v62 }
  0x20   :  { %306 = vmatpush.bf16.msra.mxu0 %v733_v5  ;;  %873 = vmatpush.bf16.msra.mxu3 %v733_v5 }
  0x21   :  { %395 = vmatpush.bf16.msra.mxu1 %v737_v6  ;;  %484 = vmatpush.bf16.msra.mxu2 %v741_v9 }
  0x23   :  { %307 = vmatmul.bf16.vlgmr.msra.gmra.mxu0 %v826_v10  ;;  %367 = vmatmul.bf16.vlgmr.msra.gmra.mxu3 %v1085_v11 }
  0x24   :  { %874 = vmatpush.bf16.msrb.mxu3 %v923_v7  ;;  %396 = vmatmul.bf16.vlgmr.msra.gmra.mxu1 %v826_v10  ;;  %v828_v7 = vld [vmem:[%s1446_s0 + $0x10] sm:$0xff] }
  0x25   :  { %485 = vmatmul.bf16.vlgmr.msra.gmra.mxu2 %v826_v10 }
  0x28   :  { %875 = vmatpush.bf16.msrb.mxu3 %v947_v16  ;;  %v1120_v16 = vld [vmem:[%s1446_s0 + $0x78] sm:$0xff] }
  0x2c   :  { %876 = vmatpush.bf16.msrb.mxu3 %v971_v25 }
  0x30   :  { %877 = vmatpush.bf16.msrb.mxu3 %v995_v34 }
  0x33   :  { %312 = vmatmul.bf16.gmra.mxu0 %v827_v12  ;;  %372 = vmatmul.bf16.gmra.mxu3 %v1098_v13 }
  0x34   :  { %878 = vmatpush.bf16.msrb.mxu3 %v773_v43  ;;  %401 = vmatmul.bf16.gmra.mxu1 %v827_v12 }
  0x35   :  { %490 = vmatmul.bf16.gmra.mxu2 %v827_v12 }
  0x38   :  { %879 = vmatpush.bf16.msrb.mxu3 %v761_v52 }
  0x3c   :  { %880 = vmatpush.bf16.msrb.mxu3 %v749_v61 }
  0x40   :  { %881 = vmatpush.bf16.msrb.mxu3 %v737_v6 }
  0x43   :  { %317 = vmatmul.bf16.gmra.mxu0 %v828_v7  ;;  %377 = vmatmul.bf16.gmra.mxu3 %v1107_v14 }
  0x44   :  { %882 = vmatpush.bf16.msra.mxu3 %v925_v8  ;;  %406 = vmatmul.bf16.gmra.mxu1 %v828_v7  ;;  %v830_v8 = vld [vmem:[%s1446_s0 + $0x20] sm:$0xff] }
  0x45   :  { %495 = vmatmul.bf16.gmra.mxu2 %v828_v7 }
  0x48   :  { %883 = vmatpush.bf16.msra.mxu3 %v949_v17  ;;  %v831_v17 = vld [vmem:[%s1446_s0 + $0x28] sm:$0xff] }
  0x4c   :  { %884 = vmatpush.bf16.msra.mxu3 %v973_v26 }
  0x50   :  { %885 = vmatpush.bf16.msra.mxu3 %v997_v35 }
  0x53   :  { %322 = vmatmul.bf16.gmra.mxu0 %v829_v15  ;;  %382 = vmatmul.bf16.gmra.mxu3 %v1120_v16 }
  0x54   :  { %886 = vmatpush.bf16.msra.mxu3 %v1019_v44  ;;  %411 = vmatmul.bf16.gmra.mxu1 %v829_v15 }
  0x55   :  { %500 = vmatmul.bf16.gmra.mxu2 %v829_v15 }
  0x58   :  { %887 = vmatpush.bf16.msra.mxu3 %v1040_v53 }
  0x5c   :  { %888 = vmatpush.bf16.msra.mxu3 %v753_v62 }
  0x60   :  { %889 = vmatpush.bf16.msra.mxu3 %v741_v9 }
  0x63   :  { %327 = vmatmul.bf16.gmra.mxu0 %v830_v8  ;;  %456 = vmatmul.bf16.vlgmr.msrb.gmra.mxu3 %v1085_v11 }
  0x64   :  { %416 = vmatmul.bf16.gmra.mxu1 %v830_v8 }
  0x65   :  { %505 = vmatmul.bf16.gmra.mxu2 %v830_v8 }
  0x73   :  { %332 = vmatmul.bf16.gmra.mxu0 %v831_v17  ;;  %461 = vmatmul.bf16.gmra.mxu3 %v1098_v13 }
  0x74   :  { %421 = vmatmul.bf16.gmra.mxu1 %v831_v17 }
  0x75   :  { %510 = vmatmul.bf16.gmra.mxu2 %v831_v17 }
  0x83   :  { %337 = vmatmul.bf16.gmra.mxu0 %v832_v18  ;;  %466 = vmatmul.bf16.gmra.mxu3 %v1107_v14 }
  0x84   :  { %426 = vmatmul.bf16.gmra.mxu1 %v832_v18 }
  0x85   :  { %515 = vmatmul.bf16.gmra.mxu2 %v832_v18 }
  0x93   :  { %342 = vmatmul.bf16.gmra.mxu0 %v833_v19  ;;  %471 = vmatmul.bf16.gmra.mxu3 %v1120_v16 }
  0x94   :  { %431 = vmatmul.bf16.gmra.mxu1 %v833_v19 }
  0x95   :  { %520 = vmatmul.bf16.gmra.mxu2 %v833_v19 }
  0xa0   :  { %v308_v21 = vpop.f32.mrf.mxu0 }
  0xa1   :  { %566 = vst [vmem:[%s1447_s2] sm:$0xff] %v308_v21  ;;  %v397_v22 = vpop.f32.mrf.mxu1 }
  0xa2   :  { %567 = vst [vmem:[%s1447_s2 + $0x8] sm:$0xff] %v397_v22 }
  0xa3   :  { %347 = vmatmul.bf16.gmra.mxu0 %v834_v20  ;;  %545 = vmatmul.bf16.vlgmr.msra.gmra.mxu3 %v1085_v11 }
  0xa4   :  { %436 = vmatmul.bf16.gmra.mxu1 %v834_v20 }
  0xa5   :  { %525 = vmatmul.bf16.gmra.mxu2 %v834_v20 }
  0xa6   :  { %v368_v23 = vpop.f32.mrf.mxu3 }
  0xa7   :  { %638 = vst [vmem:[%s1447_s2 + $0x240] sm:$0xff] %v368_v23 }
  0xa8   :  { %v486_v24 = vpop.f32.mrf.mxu2  ;;  %v310_v25 = vpop.f32.mrf.mxu0 }
  0xa9   :  { %568 = vst [vmem:[%s1447_s2 + $0x10] sm:$0xff] %v486_v24  ;;  %v399_v26 = vpop.f32.mrf.mxu1 }
  0xaa   :  { %569 = vst [vmem:[%s1447_s2 + $0x18] sm:$0xff] %v310_v25 }
  0xab   :  { %570 = vst [vmem:[%s1447_s2 + $0x20] sm:$0xff] %v399_v26 }
  0xae   :  { %v370_v27 = vpop.f32.mrf.mxu3 }
  0xaf   :  { %641 = vst [vmem:[%s1447_s2 + $0x258] sm:$0xff] %v370_v27 }
  0xb0   :  { %v488_v28 = vpop.f32.mrf.mxu2  ;;  %v313_v30 = vpop.f32.mrf.mxu0 }
  0xb1   :  { %571 = vst [vmem:[%s1447_s2 + $0x28] sm:$0xff] %v488_v28  ;;  %v402_v31 = vpop.f32.mrf.mxu1 }
  0xb2   :  { %572 = vst [vmem:[%s1447_s2 + $0x30] sm:$0xff] %v313_v30 }
  0xb3   :  { %573 = vst [vmem:[%s1447_s2 + $0x38] sm:$0xff] %v402_v31  ;;  %352 = vmatmul.bf16.gmra.mxu0 %v835_v29  ;;  %550 = vmatmul.bf16.gmra.mxu3 %v1098_v13 }
  0xb4   :  { %441 = vmatmul.bf16.gmra.mxu1 %v835_v29 }
  0xb5   :  { %530 = vmatmul.bf16.gmra.mxu2 %v835_v29 }
  0xb6   :  { %v373_v32 = vpop.f32.mrf.mxu3 }
  0xb7   :  { %644 = vst [vmem:[%s1447_s2 + $0x270] sm:$0xff] %v373_v32 }
  0xb8   :  { %v491_v33 = vpop.f32.mrf.mxu2  ;;  %v315_v34 = vpop.f32.mrf.mxu0 }
  0xb9   :  { %574 = vst [vmem:[%s1447_s2 + $0x40] sm:$0xff] %v491_v33  ;;  %v404_v35 = vpop.f32.mrf.mxu1 }
  0xba   :  { %575 = vst [vmem:[%s1447_s2 + $0x48] sm:$0xff] %v315_v34 }
  0xbb   :  { %576 = vst [vmem:[%s1447_s2 + $0x50] sm:$0xff] %v404_v35 }
  0xbe   :  { %v375_v36 = vpop.f32.mrf.mxu3 }
  0xbf   :  { %647 = vst [vmem:[%s1447_s2 + $0x288] sm:$0xff] %v375_v36 }
  0xc0   :  { %v493_v37 = vpop.f32.mrf.mxu2  ;;  %v318_v39 = vpop.f32.mrf.mxu0 }
  0xc1   :  { %577 = vst [vmem:[%s1447_s2 + $0x58] sm:$0xff] %v493_v37  ;;  %v407_v40 = vpop.f32.mrf.mxu1 }
  0xc2   :  { %578 = vst [vmem:[%s1447_s2 + $0x60] sm:$0xff] %v318_v39 }
  0xc3   :  { %579 = vst [vmem:[%s1447_s2 + $0x68] sm:$0xff] %v407_v40  ;;  %357 = vmatmul.bf16.gmra.mxu0 %v836_v38  ;;  %555 = vmatmul.bf16.gmra.mxu3 %v1107_v14 }
  0xc4   :  { %446 = vmatmul.bf16.gmra.mxu1 %v836_v38 }
  0xc5   :  { %535 = vmatmul.bf16.gmra.mxu2 %v836_v38 }
  0xc6   :  { %v378_v41 = vpop.f32.mrf.mxu3 }
  0xc7   :  { %650 = vst [vmem:[%s1447_s2 + $0x2a0] sm:$0xff] %v378_v41 }
  0xc8   :  { %v496_v42 = vpop.f32.mrf.mxu2  ;;  %v320_v43 = vpop.f32.mrf.mxu0 }
  0xc9   :  { %580 = vst [vmem:[%s1447_s2 + $0x70] sm:$0xff] %v496_v42  ;;  %v409_v44 = vpop.f32.mrf.mxu1 }
  0xca   :  { %581 = vst [vmem:[%s1447_s2 + $0x78] sm:$0xff] %v320_v43 }
  0xcb   :  { %582 = vst [vmem:[%s1447_s2 + $0x80] sm:$0xff] %v409_v44 }
  0xce   :  { %v380_v45 = vpop.f32.mrf.mxu3 }
  0xcf   :  { %653 = vst [vmem:[%s1447_s2 + $0x2b8] sm:$0xff] %v380_v45 }
  0xd0   :  { %v498_v46 = vpop.f32.mrf.mxu2  ;;  %v323_v48 = vpop.f32.mrf.mxu0 }
  0xd1   :  { %583 = vst [vmem:[%s1447_s2 + $0x88] sm:$0xff] %v498_v46  ;;  %v412_v49 = vpop.f32.mrf.mxu1 }
  0xd2   :  { %584 = vst [vmem:[%s1447_s2 + $0x90] sm:$0xff] %v323_v48 }
  0xd3   :  { %585 = vst [vmem:[%s1447_s2 + $0x98] sm:$0xff] %v412_v49  ;;  %362 = vmatmul.bf16.gmra.mxu0 %v837_v47  ;;  %560 = vmatmul.bf16.gmra.mxu3 %v1120_v16 }
  0xd4   :  { %451 = vmatmul.bf16.gmra.mxu1 %v837_v47 }
  0xd5   :  { %540 = vmatmul.bf16.gmra.mxu2 %v837_v47 }
  0xd6   :  { %v383_v50 = vpop.f32.mrf.mxu3 }
  0xd7   :  { %656 = vst [vmem:[%s1447_s2 + $0x2d0] sm:$0xff] %v383_v50 }
  0xd8   :  { %v501_v51 = vpop.f32.mrf.mxu2  ;;  %v325_v52 = vpop.f32.mrf.mxu0 }
  0xd9   :  { %586 = vst [vmem:[%s1447_s2 + $0xa0] sm:$0xff] %v501_v51  ;;  %v414_v53 = vpop.f32.mrf.mxu1 }
  0xda   :  { %587 = vst [vmem:[%s1447_s2 + $0xa8] sm:$0xff] %v325_v52 }
  0xdb   :  { %588 = vst [vmem:[%s1447_s2 + $0xb0] sm:$0xff] %v414_v53 }
  0xde   :  { %v385_v54 = vpop.f32.mrf.mxu3 }
  0xdf   :  { %659 = vst [vmem:[%s1447_s2 + $0x2e8] sm:$0xff] %v385_v54 }
  0xe0   :  { %v503_v55 = vpop.f32.mrf.mxu2  ;;  %v328_v56 = vpop.f32.mrf.mxu0 }
  0xe1   :  { %589 = vst [vmem:[%s1447_s2 + $0xb8] sm:$0xff] %v503_v55  ;;  %v417_v57 = vpop.f32.mrf.mxu1 }
  0xe2   :  { %590 = vst [vmem:[%s1447_s2 + $0xc0] sm:$0xff] %v328_v56 }
  0xe3   :  { %591 = vst [vmem:[%s1447_s2 + $0xc8] sm:$0xff] %v417_v57 }
  0xe6   :  { %v457_v58 = vpop.f32.mrf.mxu3 }
  0xe7   :  { %639 = vst [vmem:[%s1447_s2 + $0x248] sm:$0xff] %v457_v58 }
  0xe8   :  { %v506_v59 = vpop.f32.mrf.mxu2  ;;  %v330_v60 = vpop.f32.mrf.mxu0 }
  0xe9   :  { %592 = vst [vmem:[%s1447_s2 + $0xd0] sm:$0xff] %v506_v59  ;;  %v419_v61 = vpop.f32.mrf.mxu1 }
  0xea   :  { %593 = vst [vmem:[%s1447_s2 + $0xd8] sm:$0xff] %v330_v60 }
  0xeb   :  { %594 = vst [vmem:[%s1447_s2 + $0xe0] sm:$0xff] %v419_v61 }
  0xee   :  { %v459_v62 = vpop.f32.mrf.mxu3 }
  0xef   :  { %642 = vst [vmem:[%s1447_s2 + $0x260] sm:$0xff] %v459_v62 }
  0xf0   :  { %v508_v63 = vpop.f32.mrf.mxu2  ;;  %v333_v0 = vpop.f32.mrf.mxu0 }
  0xf1   :  { %595 = vst [vmem:[%s1447_s2 + $0xe8] sm:$0xff] %v508_v63  ;;  %v422_v1 = vpop.f32.mrf.mxu1 }
  0xf2   :  { %596 = vst [vmem:[%s1447_s2 + $0xf0] sm:$0xff] %v333_v0 }
  0xf3   :  { %597 = vst [vmem:[%s1447_s2 + $0xf8] sm:$0xff] %v422_v1 }
  0xf6   :  { %v462_v2 = vpop.f32.mrf.mxu3 }
  0xf7   :  { %645 = vst [vmem:[%s1447_s2 + $0x278] sm:$0xff] %v462_v2 }
  0xf8   :  { %v511_v3 = vpop.f32.mrf.mxu2  ;;  %v335_v4 = vpop.f32.mrf.mxu0 }
  0xf9   :  { %598 = vst [vmem:[%s1447_s2 + $0x100] sm:$0xff] %v511_v3  ;;  %v424_v5 = vpop.f32.mrf.mxu1 }
  0xfa   :  { %599 = vst [vmem:[%s1447_s2 + $0x108] sm:$0xff] %v335_v4 }
  0xfb   :  { %600 = vst [vmem:[%s1447_s2 + $0x110] sm:$0xff] %v424_v5 }
  0xfe   :  { %v464_v6 = vpop.f32.mrf.mxu3 }
  0xff   :  { %648 = vst [vmem:[%s1447_s2 + $0x290] sm:$0xff] %v464_v6 }
 0x100   :  { %v513_v9 = vpop.f32.mrf.mxu2  ;;  %v338_v10 = vpop.f32.mrf.mxu0 }
 0x101   :  { %601 = vst [vmem:[%s1447_s2 + $0x118] sm:$0xff] %v513_v9  ;;  %v427_v11 = vpop.f32.mrf.mxu1 }
 0x102   :  { %602 = vst [vmem:[%s1447_s2 + $0x120] sm:$0xff] %v338_v10 }
 0x103   :  { %603 = vst [vmem:[%s1447_s2 + $0x128] sm:$0xff] %v427_v11 }
 0x106   :  { %v467_v12 = vpop.f32.mrf.mxu3 }
 0x107   :  { %651 = vst [vmem:[%s1447_s2 + $0x2a8] sm:$0xff] %v467_v12 }
 0x108   :  { %v516_v13 = vpop.f32.mrf.mxu2  ;;  %v340_v7 = vpop.f32.mrf.mxu0 }
 0x109   :  { %604 = vst [vmem:[%s1447_s2 + $0x130] sm:$0xff] %v516_v13  ;;  %v429_v14 = vpop.f32.mrf.mxu1 }
 0x10a   :  { %605 = vst [vmem:[%s1447_s2 + $0x138] sm:$0xff] %v340_v7 }
 0x10b   :  { %606 = vst [vmem:[%s1447_s2 + $0x140] sm:$0xff] %v429_v14 }
 0x10e   :  { %v469_v15 = vpop.f32.mrf.mxu3 }
 0x10f   :  { %654 = vst [vmem:[%s1447_s2 + $0x2c0] sm:$0xff] %v469_v15 }
 0x110   :  { %v518_v16 = vpop.f32.mrf.mxu2  ;;  %v343_v8 = vpop.f32.mrf.mxu0 }
 0x111   :  { %607 = vst [vmem:[%s1447_s2 + $0x148] sm:$0xff] %v518_v16  ;;  %v432_v17 = vpop.f32.mrf.mxu1 }
 0x112   :  { %608 = vst [vmem:[%s1447_s2 + $0x150] sm:$0xff] %v343_v8 }
 0x113   :  { %609 = vst [vmem:[%s1447_s2 + $0x158] sm:$0xff] %v432_v17 }
 0x116   :  { %v472_v18 = vpop.f32.mrf.mxu3 }
 0x117   :  { %657 = vst [vmem:[%s1447_s2 + $0x2d8] sm:$0xff] %v472_v18 }
 0x118   :  { %v521_v19 = vpop.f32.mrf.mxu2  ;;  %v345_v20 = vpop.f32.mrf.mxu0 }
 0x119   :  { %610 = vst [vmem:[%s1447_s2 + $0x160] sm:$0xff] %v521_v19  ;;  %v434_v21 = vpop.f32.mrf.mxu1 }
 0x11a   :  { %611 = vst [vmem:[%s1447_s2 + $0x168] sm:$0xff] %v345_v20 }
 0x11b   :  { %612 = vst [vmem:[%s1447_s2 + $0x170] sm:$0xff] %v434_v21 }
 0x11e   :  { %v474_v22 = vpop.f32.mrf.mxu3 }
 0x11f   :  { %660 = vst [vmem:[%s1447_s2 + $0x2f0] sm:$0xff] %v474_v22 }
 0x120   :  { %v523_v23 = vpop.f32.mrf.mxu2  ;;  %v348_v24 = vpop.f32.mrf.mxu0 }
 0x121   :  { %613 = vst [vmem:[%s1447_s2 + $0x178] sm:$0xff] %v523_v23  ;;  %v437_v25 = vpop.f32.mrf.mxu1 }
 0x122   :  { %614 = vst [vmem:[%s1447_s2 + $0x180] sm:$0xff] %v348_v24 }
 0x123   :  { %615 = vst [vmem:[%s1447_s2 + $0x188] sm:$0xff] %v437_v25 }
 0x126   :  { %v546_v26 = vpop.f32.mrf.mxu3 }
 0x127   :  { %640 = vst [vmem:[%s1447_s2 + $0x250] sm:$0xff] %v546_v26 }
 0x128   :  { %v526_v27 = vpop.f32.mrf.mxu2  ;;  %v350_v28 = vpop.f32.mrf.mxu0 }
 0x129   :  { %616 = vst [vmem:[%s1447_s2 + $0x190] sm:$0xff] %v526_v27  ;;  %v439_v29 = vpop.f32.mrf.mxu1 }
 0x12a   :  { %617 = vst [vmem:[%s1447_s2 + $0x198] sm:$0xff] %v350_v28 }
 0x12b   :  { %618 = vst [vmem:[%s1447_s2 + $0x1a0] sm:$0xff] %v439_v29 }
 0x12e   :  { %v548_v30 = vpop.f32.mrf.mxu3 }
 0x12f   :  { %643 = vst [vmem:[%s1447_s2 + $0x268] sm:$0xff] %v548_v30 }
 0x130   :  { %v528_v31 = vpop.f32.mrf.mxu2  ;;  %v353_v32 = vpop.f32.mrf.mxu0 }
 0x131   :  { %619 = vst [vmem:[%s1447_s2 + $0x1a8] sm:$0xff] %v528_v31  ;;  %v442_v33 = vpop.f32.mrf.mxu1 }
 0x132   :  { %620 = vst [vmem:[%s1447_s2 + $0x1b0] sm:$0xff] %v353_v32 }
 0x133   :  { %621 = vst [vmem:[%s1447_s2 + $0x1b8] sm:$0xff] %v442_v33 }
 0x136   :  { %v551_v34 = vpop.f32.mrf.mxu3 }
 0x137   :  { %646 = vst [vmem:[%s1447_s2 + $0x280] sm:$0xff] %v551_v34 }
 0x138   :  { %v531_v35 = vpop.f32.mrf.mxu2  ;;  %v355_v36 = vpop.f32.mrf.mxu0 }
 0x139   :  { %622 = vst [vmem:[%s1447_s2 + $0x1c0] sm:$0xff] %v531_v35  ;;  %v444_v37 = vpop.f32.mrf.mxu1 }
 0x13a   :  { %623 = vst [vmem:[%s1447_s2 + $0x1c8] sm:$0xff] %v355_v36 }
 0x13b   :  { %624 = vst [vmem:[%s1447_s2 + $0x1d0] sm:$0xff] %v444_v37 }
 0x13e   :  { %v553_v38 = vpop.f32.mrf.mxu3 }
 0x13f   :  { %649 = vst [vmem:[%s1447_s2 + $0x298] sm:$0xff] %v553_v38 }
 0x140   :  { %v533_v39 = vpop.f32.mrf.mxu2  ;;  %v358_v40 = vpop.f32.mrf.mxu0 }
 0x141   :  { %625 = vst [vmem:[%s1447_s2 + $0x1d8] sm:$0xff] %v533_v39  ;;  %v447_v41 = vpop.f32.mrf.mxu1 }
 0x142   :  { %626 = vst [vmem:[%s1447_s2 + $0x1e0] sm:$0xff] %v358_v40 }
 0x143   :  { %627 = vst [vmem:[%s1447_s2 + $0x1e8] sm:$0xff] %v447_v41 }
 0x146   :  { %v556_v42 = vpop.f32.mrf.mxu3 }
 0x147   :  { %652 = vst [vmem:[%s1447_s2 + $0x2b0] sm:$0xff] %v556_v42 }
 0x148   :  { %v536_v43 = vpop.f32.mrf.mxu2  ;;  %v360_v44 = vpop.f32.mrf.mxu0 }
 0x149   :  { %628 = vst [vmem:[%s1447_s2 + $0x1f0] sm:$0xff] %v536_v43  ;;  %v449_v45 = vpop.f32.mrf.mxu1 }
 0x14a   :  { %629 = vst [vmem:[%s1447_s2 + $0x1f8] sm:$0xff] %v360_v44 }
 0x14b   :  { %630 = vst [vmem:[%s1447_s2 + $0x200] sm:$0xff] %v449_v45 }
 0x14e   :  { %v558_v46 = vpop.f32.mrf.mxu3 }
 0x14f   :  { %655 = vst [vmem:[%s1447_s2 + $0x2c8] sm:$0xff] %v558_v46 }
 0x150   :  { %v538_v47 = vpop.f32.mrf.mxu2  ;;  %v363_v48 = vpop.f32.mrf.mxu0 }
 0x151   :  { %631 = vst [vmem:[%s1447_s2 + $0x208] sm:$0xff] %v538_v47  ;;  %v452_v49 = vpop.f32.mrf.mxu1 }
 0x152   :  { %632 = vst [vmem:[%s1447_s2 + $0x210] sm:$0xff] %v363_v48 }
 0x153   :  { %633 = vst [vmem:[%s1447_s2 + $0x218] sm:$0xff] %v452_v49 }
 0x156   :  { %v561_v50 = vpop.f32.mrf.mxu3 }
 0x157   :  { %658 = vst [vmem:[%s1447_s2 + $0x2e0] sm:$0xff] %v561_v50 }
 0x158   :  { %v541_v51 = vpop.f32.mrf.mxu2  ;;  %v365_v52 = vpop.f32.mrf.mxu0 }
 0x159   :  { %634 = vst [vmem:[%s1447_s2 + $0x220] sm:$0xff] %v541_v51  ;;  %v454_v53 = vpop.f32.mrf.mxu1 }
 0x15a   :  { %635 = vst [vmem:[%s1447_s2 + $0x228] sm:$0xff] %v365_v52 }
 0x15b   :  { %636 = vst [vmem:[%s1447_s2 + $0x230] sm:$0xff] %v454_v53 }
 0x15e   :  { %v563_v54 = vpop.f32.mrf.mxu3 }
 0x15f   :  { %661 = vst [vmem:[%s1447_s2 + $0x2f8] sm:$0xff] %v563_v54 }
 0x160   :  { %v543_v55 = vpop.f32.mrf.mxu2 }
 0x161   :  { %637 = vst [vmem:[%s1447_s2 + $0x238] sm:$0xff] %v543_v55 }

// kernel: compgcn_distmult_forward.9
= control target key start
LH: loop header
LB: loop body
LE: loop exit
PB: predicated region body
PF: predicated region fallthrough
CT: control target
= control target key end

     0   :  { %s459_s1 = inlined_call_operand.vmem [shape: bf16[256,128], index: 1, kind: input, shape index: {}]   ;;  %s460_s0 = inlined_call_operand.vmem [shape: bf16[16,128], index: 0, kind: input, shape index: {}]   ;;  %s461_s2 = inlined_call_operand.vmem [shape: f32[1,256], index: 2, kind: input, shape index: {}]   ;;  %s462_s3 = inlined_call_operand.vmem [shape: f32[16,256], index: 3, kind: output, shape index: {}]  }
   0x1   :  { %v348_v0 = vld [vmem:[%s459_s1 + $0x38] sm:$0xff]  ;;  %v347_v2 = vld [vmem:[%s459_s1 + $0x30] sm:$0xff]  ;;  %v346_v4 = vld [vmem:[%s459_s1 + $0x28] sm:$0xff] }
   0x2   :  { %v356_v1 = vld [vmem:[%s459_s1 + $0x78] sm:$0xff]  ;;  %156 = vmatpush.bf16.xpose.msra.mxu0 %v348_v0  ;;  %v355_v3 = vld [vmem:[%s459_s1 + $0x70] sm:$0xff]  ;;  %v354_v5 = vld [vmem:[%s459_s1 + $0x68] sm:$0xff] }
   0x3   :  { %170 = vmatpush.bf16.xpose.msra.mxu1 %v356_v1  ;;  %v345_v6 = vld [vmem:[%s459_s1 + $0x20] sm:$0xff]  ;;  %v344_v8 = vld [vmem:[%s459_s1 + $0x18] sm:$0xff]  ;;  %v343_v10 = vld [vmem:[%s459_s1 + $0x10] sm:$0xff] }
   0x4   :  { %v353_v7 = vld [vmem:[%s459_s1 + $0x60] sm:$0xff]  ;;  %v352_v9 = vld [vmem:[%s459_s1 + $0x58] sm:$0xff]  ;;  %v351_v11 = vld [vmem:[%s459_s1 + $0x50] sm:$0xff] }
   0x5   :  { %v342_v12 = vld [vmem:[%s459_s1 + $0x8] sm:$0xff]  ;;  %v341_v14 = vld [vmem:[%s459_s1] sm:$0xff] }
   0x6   :  { %v350_v13 = vld [vmem:[%s459_s1 + $0x48] sm:$0xff]  ;;  %v349_v15 = vld [vmem:[%s459_s1 + $0x40] sm:$0xff] }
   0x7   :  { %v340_v16 = vld [vmem:[%s460_s0] sm:$0xff] }
   0x8   :  { %v48_v17 = vld [vmem:[%s461_s2] sm:$0x3] }
   0x9   :  { %v50_v18 = vperm.slane %v48_v17, 0  ;;  %v51_v19 = vperm.slane %v48_v17, 1 }
   0xa   :  { %157 = vmatpush.bf16.xpose.msra.mxu0 %v347_v2 }
   0xb   :  { %171 = vmatpush.bf16.xpose.msra.mxu1 %v355_v3 }
  0x12   :  { %158 = vmatpush.bf16.xpose.msra.mxu0 %v346_v4 }
  0x13   :  { %172 = vmatpush.bf16.xpose.msra.mxu1 %v354_v5 }
  0x1a   :  { %159 = vmatpush.bf16.xpose.msra.mxu0 %v345_v6 }
  0x1b   :  { %173 = vmatpush.bf16.xpose.msra.mxu1 %v353_v7 }
  0x22   :  { %160 = vmatpush.bf16.xpose.msra.mxu0 %v344_v8 }
  0x23   :  { %174 = vmatpush.bf16.xpose.msra.mxu1 %v352_v9 }
  0x2a   :  { %161 = vmatpush.bf16.xpose.msra.mxu0 %v343_v10 }
  0x2b   :  { %175 = vmatpush.bf16.xpose.msra.mxu1 %v351_v11 }
  0x32   :  { %162 = vmatpush.bf16.xpose.msra.mxu0 %v342_v12 }
  0x33   :  { %176 = vmatpush.bf16.xpose.msra.mxu1 %v350_v13 }
  0x3a   :  { %163 = vmatpush.bf16.xpose.msra.mxu0 %v341_v14 }
  0x3b   :  { %177 = vmatpush.bf16.xpose.msra.mxu1 %v349_v15 }
  0x41   :  { %164 = vmatmul.bf16.vlgmr.msra.gmra.mxu0 %v340_v16 }
  0x42   :  { %178 = vmatmul.bf16.vlgmr.msra.gmra.mxu1 %v340_v16 }
  0xbe   :  { %v165_v20 = vpop.f32.mrf.mxu0 }
  0xbf   :  { %v179_v21 = vpop.f32.mrf.mxu1  ;;  %v166_v22 = vadd.f32 %v165_v20, %v50_v18 }
  0xc0   :  { %v180_v23 = vadd.f32 %v179_v21, %v51_v19 }
  0xc1   :  { %v336_v24 = vmul.f32 -1.442695, %v166_v22 }
  0xc2   :  { %v337_v25 = vmul.f32 -1.442695, %v180_v23 }
  0xc3   :  { %357 = vpow2.f32 %v336_v24 }
  0xc4   :  { %359 = vpow2.f32 %v337_v25 }
  0xc6   :  { %v167_v26 = vpop.f32.mrf.mxu0 }
  0xc7   :  { %v181_v27 = vpop.f32.mrf.mxu1  ;;  %v168_v28 = vadd.f32 %v167_v26, %v50_v18 }
  0xc8   :  { %v182_v29 = vadd.f32 %v181_v27, %v51_v19 }
  0xc9   :  { %v358_v30 = vpop.eup %357  ;;  %v338_v31 = vmul.f32 -1.442695, %v168_v28 }
  0xca   :  { %v360_v32 = vpop.eup %359  ;;  %v196_v33 = vadd.f32 1.0, %v358_v30  ;;  %v339_v34 = vmul.f32 -1.442695, %v182_v29 }
  0xcb   :  { %v197_v35 = vadd.f32 1.0, %v360_v32  ;;  %361 = vpow2.f32 %v338_v31 }
  0xcc   :  { %363 = vrcp.f32 %v196_v33  ;;  %v209_v45 = vand.u32 2147483647, %v196_v33  ;;  %v211_v46 = vand.u32 2147483648, %v196_v33  ;;  %vm205_vm2 = vweird.f32 %v196_v33 }
  0xcd   :  { %365 = vrcp.f32 %v197_v35  ;;  %v226_v49 = vand.u32 2147483648, %v197_v35  ;;  %v224_v51 = vand.u32 2147483647, %v197_v35  ;;  %vm220_vm4 = vweird.f32 %v197_v35 }
  0xce   :  { %367 = vpow2.f32 %v339_v34  ;;  %v212_v54 = vor.u32 1.1754944e-38, %v211_v46  ;;  %vm210_vm5 = vcmp.eq.f32.partialorder %v209_v45, 8.507059e+37 }
  0xcf   :  { %v227_v57 = vor.u32 1.1754944e-38, %v226_v49  ;;  %vm225_vm7 = vcmp.eq.f32.partialorder %v224_v51, 8.507059e+37 }
  0xd1   :  { %v362_v36 = vpop.eup %361 }
  0xd2   :  { %v364_v37 = vpop.eup %363  ;;  %v198_v38 = vadd.f32 1.0, %v362_v36 }
  0xd3   :  { %v366_v39 = vpop.eup %365  ;;  %v201_v40 = vmul.f32 %v364_v37, %v196_v33  ;;  %vm206_vm0 = vweird.f32 %v364_v37 }
  0xd4   :  { %v368_v41 = vpop.eup %367  ;;  %v216_v42 = vmul.f32 %v366_v39, %v197_v35  ;;  %369 = vrcp.f32 %v198_v38  ;;  %vm221_vm1 = vweird.f32 %v366_v39  ;;  %vm207_vm3 = vmor %vm205_vm2, %vm206_vm0  ;;  %v241_v0 = vand.u32 2147483648, %v198_v38 }
  0xd5   :  { %v202_v43 = vsub.f32 1.0, %v201_v40  ;;  %v199_v44 = vadd.f32 1.0, %v368_v41  ;;  %vm222_vm6 = vmor %vm220_vm4, %vm221_vm1  ;;  %v239_v3 = vand.u32 2147483647, %v198_v38  ;;  %vm235_vm9 = vweird.f32 %v198_v38 }
  0xd6   :  { %v217_v47 = vsub.f32 1.0, %v216_v42  ;;  %v242_v7 = vor.u32 1.1754944e-38, %v241_v0 }
  0xd7   :  { %v203_v48 = vmul.f32 %v364_v37, %v202_v43  ;;  %371 = vrcp.f32 %v199_v44  ;;  %v256_v6 = vand.u32 2147483648, %v199_v44  ;;  %v254_v9 = vand.u32 2147483647, %v199_v44 }
  0xd8   :  { %v218_v50 = vmul.f32 %v366_v39, %v217_v47  ;;  %vm240_vm12 = vcmp.eq.f32.partialorder %v239_v3, 8.507059e+37  ;;  %vm250_vm13 = vweird.f32 %v199_v44 }
  0xd9   :  { %v204_v52 = vadd.f32 %v364_v37, %v203_v48  ;;  %v257_v13 = vor.u32 1.1754944e-38, %v256_v6  ;;  %vm255_vm15 = vcmp.eq.f32.partialorder %v254_v9, 8.507059e+37 }
  0xda   :  { %v370_v53 = vpop.eup %369  ;;  %v219_v55 = vadd.f32 %v366_v39, %v218_v50 }
  0xdb   :  { %v208_v56 = vsel %vm207_vm3, %v364_v37, %v204_v52  ;;  %v231_v58 = vmul.f32 %v370_v53, %v198_v38  ;;  %vm236_vm8 = vweird.f32 %v370_v53 }
  0xdc   :  { %v213_v59 = vsel %vm210_vm5, %v212_v54, %v208_v56  ;;  %v223_v60 = vsel %vm222_vm6, %v366_v39, %v219_v55  ;;  %vm237_vm10 = vmor %vm235_vm9, %vm236_vm8 }
  0xdd   :  { %v372_v61 = vpop.eup %371  ;;  %260 = vst [vmem:[%s462_s3] sm:$0xff] %v213_v59  ;;  %v228_v62 = vsel %vm225_vm7, %v227_v57, %v223_v60  ;;  %v232_v63 = vsub.f32 1.0, %v231_v58 }
  0xde   :  { %261 = vst [vmem:[%s462_s3 + $0x8] sm:$0xff] %v228_v62  ;;  %v246_v1 = vmul.f32 %v372_v61, %v199_v44  ;;  %vm251_vm11 = vweird.f32 %v372_v61 }
  0xdf   :  { %v233_v2 = vmul.f32 %v370_v53, %v232_v63  ;;  %vm252_vm14 = vmor %vm250_vm13, %vm251_vm11 }
  0xe0   :  { %v247_v4 = vsub.f32 1.0, %v246_v1 }
  0xe1   :  { %v234_v5 = vadd.f32 %v370_v53, %v233_v2 }
  0xe2   :  { %v248_v8 = vmul.f32 %v372_v61, %v247_v4 }
  0xe3   :  { %v238_v10 = vsel %vm237_vm10, %v370_v53, %v234_v5 }
  0xe4   :  { %v243_v11 = vsel %vm240_vm12, %v242_v7, %v238_v10  ;;  %v249_v12 = vadd.f32 %v372_v61, %v248_v8 }
  0xe5   :  { %262 = vst [vmem:[%s462_s3 + $0x10] sm:$0xff] %v243_v11 }
  0xe6   :  { %v253_v14 = vsel %vm252_vm14, %v372_v61, %v249_v12 }
  0xe7   :  { %v258_v15 = vsel %vm255_vm15, %v257_v13, %v253_v14 }
  0xe8   :  { %263 = vst [vmem:[%s462_s3 + $0x18] sm:$0xff] %v258_v15 }

</bundles_post_ra>
